<compile_context>
chip_gen: v7x
topology: tpu7x:2x2x1
jax: 0.10.0
libtpu: 0.0.40
codegen_flags: <defaults>
</compile_context>

<pallas_src>
import jax
import jax.numpy as jnp
from jax.experimental import pallas as pl
from jax.experimental.pallas import tpu as pltpu

NUM_TOOLS = 6           # len(tool_to_index)
C_CONV = 64             # conv1 out_channels
L_IN = 3                # input length
L_CONV = L_IN + 1       # Conv1d(k=2, stride=1, pad=1) output length = 4
L_PAD = L_IN + 2        # padded input length = 5
L_POOL = L_CONV // 2    # MaxPool1d(k=2) output length = 2
FLAT = L_POOL * C_CONV  # 128 = fc1.in_features
H1, H2 = 128, 256
OUT_PAD = 128           # lane-dense padded logits width (>= NUM_TOOLS)


def _round_up(n, m):
    return (n + m - 1) // m * m


def cnn_kernel(xp_ref, wc_ref, bc_ref,
               w1_ref, b1_ref, w2_ref, b2_ref, w3_ref, b3_ref,
               out_ref):
    xp = xp_ref[...]                                              # (TB, 5) f32

    # Conv1d + MaxPool1d(k=2) + bias + ReLU as a single MXU matmul:
    # wc = [we | wo] (5, 256); halves are the even / odd conv positions in
    # position-major flatten order (p*64 + c).  ReLU commutes with max.
    eo = jnp.dot(xp, wc_ref[...], preferred_element_type=jnp.float32)
    flat = jnp.maximum(
        jnp.maximum(eo[:, :FLAT], eo[:, FLAT:]) + bc_ref[...], 0.0)  # (TB,128)

    h1 = jnp.maximum(
        jnp.dot(flat.astype(jnp.bfloat16), w1_ref[...],
                preferred_element_type=jnp.float32) + b1_ref[...], 0.0)
    # Dropout(0.5): identity at inference time.
    h2 = jnp.maximum(
        jnp.dot(h1.astype(jnp.bfloat16), w2_ref[...],
                preferred_element_type=jnp.float32) + b2_ref[...], 0.0)
    out_ref[...] = (
        jnp.dot(h2.astype(jnp.bfloat16), w3_ref[...],
                preferred_element_type=jnp.float32) + b3_ref[...])  # (TB, 128)


def prepare_params(params):
    """One-time parameter glue (runs at model-load time, not per forward)."""
    w = params["conv_w"]                       # (64, 1, 2)
    w0, w1 = w[:, 0, 0], w[:, 0, 1]            # (64,), (64,)
    b = params["conv_b"]                       # (64,)

    # (5, 128) weight matrices for the even / odd conv output positions,
    # packed side-by-side into one (5, 256) slab -> single MXU push in-kernel.
    we = jnp.zeros((L_PAD, FLAT), jnp.float32)
    wo = jnp.zeros((L_PAD, FLAT), jnp.float32)
    for p in range(L_POOL):
        cols = slice(p * C_CONV, (p + 1) * C_CONV)
        we = we.at[2 * p, cols].set(w0).at[2 * p + 1, cols].set(w1)
        wo = wo.at[2 * p + 1, cols].set(w0).at[2 * p + 2, cols].set(w1)
    wc = jnp.concatenate([we, wo], axis=1)                # (5, 256)
    bc = jnp.tile(b, (L_POOL,)).reshape(1, FLAT)          # bias at p*64+c = b[c]

    # Permute fc1 rows so the kernel's position-major flatten (p*64 + c)
    # matches PyTorch's channel-major .view() flatten (c*2 + p).
    idx = jnp.arange(FLAT)
    perm = (idx % C_CONV) * L_POOL + (idx // C_CONV)
    w1p = params["fc1_w"][perm, :].astype(jnp.bfloat16)

    # Lane-dense fc3: zero-pad the 6-wide output to 128 lanes.
    w3 = jnp.zeros((H2, OUT_PAD), jnp.float32).at[:, :NUM_TOOLS].set(
        params["fc3_w"]).astype(jnp.bfloat16)
    b3 = jnp.zeros((1, OUT_PAD), jnp.float32).at[:, :NUM_TOOLS].set(
        params["fc3_b"].reshape(1, NUM_TOOLS))

    return dict(
        conv_wc=wc, conv_b=bc,
        fc1_w=w1p, fc1_b=params["fc1_b"].reshape(1, H1).astype(jnp.float32),
        fc2_w=params["fc2_w"].astype(jnp.bfloat16),
        fc2_b=params["fc2_b"].reshape(1, H2).astype(jnp.float32),
        fc3_w=w3, fc3_b=b3,
    )


def cnn_forward(x, pp, *, tb=256):
    """x: (B, L_IN) float32, pp: prepare_params(...) -> logits (B, NUM_TOOLS)."""
    B = x.shape[0]
    # Batch tile: multiple of 256 at large batch (v6e/v7x MXU); shrink for tiny B.
    TB = min(tb, _round_up(B, 8))
    Bp = _round_up(B, TB)

    # Conv1d padding=1 + batch padding to the tile (layout glue, no compute).
    xp = jnp.pad(x, ((0, Bp - B), (1, 1)))                # (Bp, 5)

    args = (
        xp,
        pp["conv_wc"], pp["conv_b"],
        pp["fc1_w"], pp["fc1_b"],
        pp["fc2_w"], pp["fc2_b"],
        pp["fc3_w"], pp["fc3_b"],
    )

    const2d = lambda i: (0, 0)                            # weights: stay resident
    in_specs = [pl.BlockSpec((TB, L_PAD), lambda i: (i, 0))] + [
        pl.BlockSpec(a.shape, const2d) for a in args[1:]
    ]
    out_specs = pl.BlockSpec((TB, OUT_PAD), lambda i: (i, 0))

    flops = 2 * Bp * (L_PAD * 2 * FLAT + FLAT * H1 + H1 * H2 + H2 * OUT_PAD)
    bytes_accessed = (sum(int(a.size) * a.dtype.itemsize for a in args)
                      + Bp * OUT_PAD * 4)

    out = pl.pallas_call(
        cnn_kernel,
        out_shape=jax.ShapeDtypeStruct((Bp, OUT_PAD), jnp.float32),
        grid=(Bp // TB,),
        in_specs=in_specs,
        out_specs=out_specs,
        compiler_params=pltpu.CompilerParams(
            dimension_semantics=("parallel",),          # v7x: shard over 2 TCs
            vmem_limit_bytes=32 * 1024 * 1024,
        ),
        cost_estimate=pl.CostEstimate(
            flops=flops, transcendentals=0, bytes_accessed=bytes_accessed),
    )(*args)

    return out[:B, :NUM_TOOLS]


def cnn_reference(x, params):
    """Pure-JAX f32 replica of the PyTorch forward (eval mode)."""
    B = x.shape[0]
    xp = jnp.pad(x, ((0, 0), (1, 1)))
    w = params["conv_w"]                                    # (64, 1, 2)
    conv = (xp[:, None, :L_CONV] * w[None, :, 0, 0:1]
            + xp[:, None, 1:L_CONV + 1] * w[None, :, 0, 1:2]
            + params["conv_b"][None, :, None])              # (B, 64, 4)
    conv = jnp.maximum(conv, 0.0)
    pool = jnp.max(conv.reshape(B, C_CONV, L_POOL, 2), axis=3)   # (B, 64, 2)
    flat = pool.reshape(B, C_CONV * L_POOL)                 # torch .view: c*2+p
    h1 = jnp.maximum(flat @ params["fc1_w"] + params["fc1_b"], 0.0)
    h2 = jnp.maximum(h1 @ params["fc2_w"] + params["fc2_b"], 0.0)
    return h2 @ params["fc3_w"] + params["fc3_b"]


if __name__ == "__main__":
    key = jax.random.PRNGKey(0)
    ks = jax.random.split(key, 10)
    B = 8
    x = jax.random.normal(ks[0], (B, L_IN), jnp.float32)

    params = {
        "conv_w": 0.5 * jax.random.normal(ks[1], (C_CONV, 1, 2), jnp.float32),
        "conv_b": 0.1 * jax.random.normal(ks[2], (C_CONV,), jnp.float32),
        "fc1_w": jax.random.normal(ks[3], (FLAT, H1), jnp.float32) / 12.0,
        "fc1_b": 0.1 * jax.random.normal(ks[4], (H1,), jnp.float32),
        "fc2_w": jax.random.normal(ks[5], (H1, H2), jnp.float32) / 12.0,
        "fc2_b": 0.1 * jax.random.normal(ks[6], (H2,), jnp.float32),
        "fc3_w": jax.random.normal(ks[7], (H2, NUM_TOOLS), jnp.float32) / 16.0,
        "fc3_b": 0.1 * jax.random.normal(ks[8], (NUM_TOOLS,), jnp.float32),
    }

    pp = jax.tree_util.tree_map(jax.block_until_ready, prepare_params(params))
    fwd = jax.jit(cnn_forward, static_argnames=("tb",))

    out = jax.block_until_ready(fwd(x, pp))
    ref = cnn_reference(x, params)

    assert out.shape == (B, NUM_TOOLS), out.shape
    max_err = float(jnp.max(jnp.abs(out - ref)))
    # bf16 matmul operands with f32 accumulation -> looser tolerance than f32.
    assert max_err < 1e-1, f"max abs err = {max_err}"
    print("KERNEL_OK")
</pallas_src>

<mosaic_0001>
module attributes {stable_mosaic.version = 11 : i64} {
  func.func @cnn_kernel(%arg0: i32, %arg1: memref<8x5xf32, #tpu.memory_space<vmem>>, %arg2: memref<5x256xf32, #tpu.memory_space<vmem>>, %arg3: memref<1x128xf32, #tpu.memory_space<vmem>>, %arg4: memref<128x128xbf16, #tpu.memory_space<vmem>>, %arg5: memref<1x128xf32, #tpu.memory_space<vmem>>, %arg6: memref<128x256xbf16, #tpu.memory_space<vmem>>, %arg7: memref<1x256xf32, #tpu.memory_space<vmem>>, %arg8: memref<256x128xbf16, #tpu.memory_space<vmem>>, %arg9: memref<1x128xf32, #tpu.memory_space<vmem>>, %arg10: memref<8x128xf32, #tpu.memory_space<vmem>>) attributes {dimension_semantics = [#tpu.dimension_semantics<parallel>], iteration_bounds = array<i64: 1>, scalar_prefetch = 0 : i64, scratch_operands = 0 : i64, tpu.core_type = #tpu.core_type<tc>, window_params = [{transform_indices = @transform_0, window_bounds = array<i64: 8, 5>}, {pipeline_mode = #tpu.pipeline_mode<synchronous>, transform_indices = @transform_1, window_bounds = array<i64: 5, 256>}, {pipeline_mode = #tpu.pipeline_mode<synchronous>, transform_indices = @transform_2, window_bounds = array<i64: 1, 128>}, {pipeline_mode = #tpu.pipeline_mode<synchronous>, transform_indices = @transform_3, window_bounds = array<i64: 128, 128>}, {pipeline_mode = #tpu.pipeline_mode<synchronous>, transform_indices = @transform_4, window_bounds = array<i64: 1, 128>}, {pipeline_mode = #tpu.pipeline_mode<synchronous>, transform_indices = @transform_5, window_bounds = array<i64: 128, 256>}, {pipeline_mode = #tpu.pipeline_mode<synchronous>, transform_indices = @transform_6, window_bounds = array<i64: 1, 256>}, {pipeline_mode = #tpu.pipeline_mode<synchronous>, transform_indices = @transform_7, window_bounds = array<i64: 256, 128>}, {pipeline_mode = #tpu.pipeline_mode<synchronous>, transform_indices = @transform_8, window_bounds = array<i64: 1, 128>}, {transform_indices = @transform_9, window_bounds = array<i64: 8, 128>}]} {
    %c0 = arith.constant 0 : index
    %c0_0 = arith.constant 0 : index
    %0 = vector.load %arg1[%c0, %c0_0] : memref<8x5xf32, #tpu.memory_space<vmem>>, vector<8x5xf32>
    %c0_1 = arith.constant 0 : index
    %c0_2 = arith.constant 0 : index
    %1 = vector.load %arg2[%c0_1, %c0_2] : memref<5x256xf32, #tpu.memory_space<vmem>>, vector<5x256xf32>
    %cst = arith.constant dense<0.000000e+00> : vector<8x256xf32>
    %2 = tpu.matmul %0, %1, %cst {dimension_numbers = #tpu.dot_dimension_numbers<[1], [0], [0], [1], [0, 0, 1, 1], [], []>} : vector<8x5xf32>, vector<5x256xf32>, vector<8x256xf32> -> vector<8x256xf32>
    %3 = vector.extract_strided_slice %2 {offsets = [0, 0], sizes = [8, 128], strides = [1, 1]} : vector<8x256xf32> to vector<8x128xf32>
    %4 = vector.extract_strided_slice %2 {offsets = [0, 128], sizes = [8, 128], strides = [1, 1]} : vector<8x256xf32> to vector<8x128xf32>
    %5 = arith.maximumf %3, %4 : vector<8x128xf32>
    %c0_3 = arith.constant 0 : index
    %c0_4 = arith.constant 0 : index
    %6 = vector.load %arg3[%c0_3, %c0_4] : memref<1x128xf32, #tpu.memory_space<vmem>>, vector<1x128xf32>
    %7 = vector.broadcast %6 : vector<1x128xf32> to vector<8x128xf32>
    %8 = arith.addf %5, %7 : vector<8x128xf32>
    %cst_5 = arith.constant 0.000000e+00 : f32
    %9 = vector.broadcast %cst_5 : f32 to vector<8x128xf32>
    %10 = arith.maximumf %8, %9 : vector<8x128xf32>
    %11 = arith.truncf %10 : vector<8x128xf32> to vector<8x128xbf16>
    %c0_6 = arith.constant 0 : index
    %c0_7 = arith.constant 0 : index
    %12 = vector.load %arg4[%c0_6, %c0_7] : memref<128x128xbf16, #tpu.memory_space<vmem>>, vector<128x128xbf16>
    %cst_8 = arith.constant dense<0.000000e+00> : vector<8x128xf32>
    %13 = tpu.matmul %11, %12, %cst_8 {dimension_numbers = #tpu.dot_dimension_numbers<[1], [0], [0], [1], [0, 0, 1, 1], [], []>} : vector<8x128xbf16>, vector<128x128xbf16>, vector<8x128xf32> -> vector<8x128xf32>
    %c0_9 = arith.constant 0 : index
    %c0_10 = arith.constant 0 : index
    %14 = vector.load %arg5[%c0_9, %c0_10] : memref<1x128xf32, #tpu.memory_space<vmem>>, vector<1x128xf32>
    %15 = vector.broadcast %14 : vector<1x128xf32> to vector<8x128xf32>
    %16 = arith.addf %13, %15 : vector<8x128xf32>
    %cst_11 = arith.constant 0.000000e+00 : f32
    %17 = vector.broadcast %cst_11 : f32 to vector<8x128xf32>
    %18 = arith.maximumf %16, %17 : vector<8x128xf32>
    %19 = arith.truncf %18 : vector<8x128xf32> to vector<8x128xbf16>
    %c0_12 = arith.constant 0 : index
    %c0_13 = arith.constant 0 : index
    %20 = vector.load %arg6[%c0_12, %c0_13] : memref<128x256xbf16, #tpu.memory_space<vmem>>, vector<128x256xbf16>
    %cst_14 = arith.constant dense<0.000000e+00> : vector<8x256xf32>
    %21 = tpu.matmul %19, %20, %cst_14 {dimension_numbers = #tpu.dot_dimension_numbers<[1], [0], [0], [1], [0, 0, 1, 1], [], []>} : vector<8x128xbf16>, vector<128x256xbf16>, vector<8x256xf32> -> vector<8x256xf32>
    %c0_15 = arith.constant 0 : index
    %c0_16 = arith.constant 0 : index
    %22 = vector.load %arg7[%c0_15, %c0_16] : memref<1x256xf32, #tpu.memory_space<vmem>>, vector<1x256xf32>
    %23 = vector.broadcast %22 : vector<1x256xf32> to vector<8x256xf32>
    %24 = arith.addf %21, %23 : vector<8x256xf32>
    %cst_17 = arith.constant 0.000000e+00 : f32
    %25 = vector.broadcast %cst_17 : f32 to vector<8x256xf32>
    %26 = arith.maximumf %24, %25 : vector<8x256xf32>
    %27 = arith.truncf %26 : vector<8x256xf32> to vector<8x256xbf16>
    %c0_18 = arith.constant 0 : index
    %c0_19 = arith.constant 0 : index
    %28 = vector.load %arg8[%c0_18, %c0_19] : memref<256x128xbf16, #tpu.memory_space<vmem>>, vector<256x128xbf16>
    %cst_20 = arith.constant dense<0.000000e+00> : vector<8x128xf32>
    %29 = tpu.matmul %27, %28, %cst_20 {dimension_numbers = #tpu.dot_dimension_numbers<[1], [0], [0], [1], [0, 0, 1, 1], [], []>} : vector<8x256xbf16>, vector<256x128xbf16>, vector<8x128xf32> -> vector<8x128xf32>
    %c0_21 = arith.constant 0 : index
    %c0_22 = arith.constant 0 : index
    %30 = vector.load %arg9[%c0_21, %c0_22] : memref<1x128xf32, #tpu.memory_space<vmem>>, vector<1x128xf32>
    %31 = vector.broadcast %30 : vector<1x128xf32> to vector<8x128xf32>
    %32 = arith.addf %29, %31 : vector<8x128xf32>
    %c0_23 = arith.constant 0 : index
    %c0_24 = arith.constant 0 : index
    %33 = vector.load %arg10[%c0_23, %c0_24] : memref<8x128xf32, #tpu.memory_space<vmem>>, vector<8x128xf32>
    tpu.vector_store %arg10[%c0_23, %c0_24], %32 {strides = array<i32>} : memref<8x128xf32, #tpu.memory_space<vmem>>, vector<8x128xf32>,
    return
  }
  func.func @transform_0(%arg0: i32) -> (i32, i32) {
    %c0_i32 = arith.constant 0 : i32
    %c0_i32_0 = arith.constant 0 : i32
    return %arg0, %c0_i32 : i32, i32
  }
  func.func @transform_1(%arg0: i32) -> (i32, i32) {
    %c0_i32 = arith.constant 0 : i32
    %c0_i32_0 = arith.constant 0 : i32
    %c0_i32_1 = arith.constant 0 : i32
    return %c0_i32, %c0_i32_0 : i32, i32
  }
  func.func @transform_2(%arg0: i32) -> (i32, i32) {
    %c0_i32 = arith.constant 0 : i32
    %c0_i32_0 = arith.constant 0 : i32
    %c0_i32_1 = arith.constant 0 : i32
    return %c0_i32, %c0_i32_0 : i32, i32
  }
  func.func @transform_3(%arg0: i32) -> (i32, i32) {
    %c0_i32 = arith.constant 0 : i32
    %c0_i32_0 = arith.constant 0 : i32
    %c0_i32_1 = arith.constant 0 : i32
    return %c0_i32, %c0_i32_0 : i32, i32
  }
  func.func @transform_4(%arg0: i32) -> (i32, i32) {
    %c0_i32 = arith.constant 0 : i32
    %c0_i32_0 = arith.constant 0 : i32
    %c0_i32_1 = arith.constant 0 : i32
    return %c0_i32, %c0_i32_0 : i32, i32
  }
  func.func @transform_5(%arg0: i32) -> (i32, i32) {
    %c0_i32 = arith.constant 0 : i32
    %c0_i32_0 = arith.constant 0 : i32
    %c0_i32_1 = arith.constant 0 : i32
    return %c0_i32, %c0_i32_0 : i32, i32
  }
  func.func @transform_6(%arg0: i32) -> (i32, i32) {
    %c0_i32 = arith.constant 0 : i32
    %c0_i32_0 = arith.constant 0 : i32
    %c0_i32_1 = arith.constant 0 : i32
    return %c0_i32, %c0_i32_0 : i32, i32
  }
  func.func @transform_7(%arg0: i32) -> (i32, i32) {
    %c0_i32 = arith.constant 0 : i32
    %c0_i32_0 = arith.constant 0 : i32
    %c0_i32_1 = arith.constant 0 : i32
    return %c0_i32, %c0_i32_0 : i32, i32
  }
  func.func @transform_8(%arg0: i32) -> (i32, i32) {
    %c0_i32 = arith.constant 0 : i32
    %c0_i32_0 = arith.constant 0 : i32
    %c0_i32_1 = arith.constant 0 : i32
    return %c0_i32, %c0_i32_0 : i32, i32
  }
  func.func @transform_9(%arg0: i32) -> (i32, i32) {
    %c0_i32 = arith.constant 0 : i32
    %c0_i32_0 = arith.constant 0 : i32
    return %arg0, %c0_i32 : i32, i32
  }
}

</mosaic_0001>

<bundles_post_ra>
// kernel: cnn_forward.1
= control target key start
LH: loop header
LB: loop body
LE: loop exit
PB: predicated region body
PF: predicated region fallthrough
CT: control target
= control target key end

     0   :  { %14 = vsyncpa [#allocation3], 0  ;;  %s1009_s0 = inlined_call_operand.vmem [shape: f32[8,5], index: 0, kind: input, shape index: {}]   ;;  %s1010_s1 = inlined_call_operand.vmem [shape: f32[5,256], index: 1, kind: input, shape index: {}]   ;;  %s1011_s2 = inlined_call_operand.vmem [shape: f32[1,128], index: 2, kind: input, shape index: {}]   ;;  %s1012_s3 = inlined_call_operand.hbm [shape: bf16[128,128], index: 3, kind: input, shape index: {}]   ;;  %s1013_s4 = inlined_call_operand.vmem [shape: f32[1,128], index: 4, kind: input, shape index: {}]   ;;  %s1014_s5 = inlined_call_operand.hbm [shape: bf16[128,256], index: 5, kind: input, shape index: {}]   ;;  %s1015_s6 = inlined_call_operand.vmem [shape: f32[1,256], index: 6, kind: input, shape index: {}]   ;;  %s1016_s7 = inlined_call_operand.hbm [shape: bf16[256,128], index: 7, kind: input, shape index: {}]   ;;  %s1017_s8 = inlined_call_operand.vmem [shape: f32[1,128], index: 8, kind: input, shape index: {}]   ;;  %s1018_s9 = inlined_call_operand.hbm [shape: f32[8,128], index: 9, kind: output, shape index: {}]  }
   0x1   :  { %15 = vsyncpa [#allocation6], 0 }
   0x2   :  { %16 = vsyncpa [#allocation4], 0  ;;  %s879_s30 = smov [#allocation5]   ;;  %s785_s13 = scalar_lea.hbm %s1014_s5, 2048 }
   0x3   :  { %s42_s10 = sshll.u32 %s879_s30, 4  ;;  %p786_p0 = scmp.ne.s32.totalorder %s1014_s5, %s785_s13  ;;  %s43_s10 = int_to_ptr.vmem [resolvable:$true] %s42_s10 }
   0x4   :  { %p789_p1 = scmp.lt.u32.totalorder %s785_s13, %s1014_s5 }
   0x6   :  { %p791_p2 = pnand %p789_p1, %p786_p0 }
   0x8   :  { %794 = shalt.err (!%p791_p2)
}
   0x9   :  { %s795_s18 = scalar_lea.vmem %s43_s10, 2048  ;;  %p800_p4 = scmp.lt.s32.totalorder %s43_s10, %s43_s10 }
   0xa   :  { %p796_p3 = scmp.ne.s32.totalorder %s43_s10, %s795_s18  ;;  %p801_p5 = scmp.lt.s32.totalorder %s795_s18, %s795_s18 }
   0xc   :  { %p802_p6 = por %p801_p5, %p800_p4 }
   0xe   :  { %p803_p7 = pnand %p802_p6, %p796_p3 }
  0x10   :  { %806 = shalt.err (!%p803_p7)
}
  0x11   :  { %s880_s19 = smov 128   ;;  %s881_s20 = smov 8  }
  0x12   :  { %48 = dma.hbm_to_vmem [thread:$0]  %s1014_s5, 2048, %s43_s10, [#allocation6], %s880_s19, %s880_s19, %s881_s20  }
  0x13   :  { %s882_s23 = smov [#allocation2]   ;;  %s807_s27 = scalar_lea.hbm %s1012_s3, 1024 }
  0x14   :  { %s28_s24 = sshll.u32 %s882_s23, 4  ;;  %p808_p8 = scmp.ne.s32.totalorder %s1012_s3, %s807_s27  ;;  %s29_s24 = int_to_ptr.vmem [resolvable:$true] %s28_s24 }
  0x15   :  { %p811_p9 = scmp.lt.u32.totalorder %s807_s27, %s1012_s3 }
  0x17   :  { %p813_p10 = pnand %p811_p9, %p808_p8 }
  0x19   :  { %816 = shalt.err (!%p813_p10)
}
  0x1a   :  { %s817_s12 = scalar_lea.vmem %s29_s24, 1024  ;;  %p822_p12 = scmp.lt.s32.totalorder %s29_s24, %s29_s24 }
  0x1b   :  { %p818_p11 = scmp.ne.s32.totalorder %s29_s24, %s817_s12  ;;  %p823_p13 = scmp.lt.s32.totalorder %s817_s12, %s817_s12 }
  0x1d   :  { %p824_p0 = por %p823_p13, %p822_p12 }
  0x1f   :  { %p825_p1 = pnand %p824_p0, %p818_p11 }
  0x21   :  { %828 = shalt.err (!%p825_p1)
}
  0x22   :  { %s883_s5 = smov 64   ;;  %s884_s10 = smov 4  }
  0x23   :  { %34 = dma.hbm_to_vmem [thread:$0]  %s1012_s3, 1024, %s29_s24, [#allocation3], %s883_s5, %s883_s5, %s884_s10  }
  0x24   :  { %s885_s15 = smov [#allocation7]   ;;  %s829_s19 = scalar_lea.hbm %s1016_s7, 2048 }
  0x25   :  { %s56_s16 = sshll.u32 %s885_s15, 4  ;;  %p830_p2 = scmp.ne.s32.totalorder %s1016_s7, %s829_s19  ;;  %s57_s16 = int_to_ptr.vmem [resolvable:$true] %s56_s16 }
  0x26   :  { %p833_p3 = scmp.lt.u32.totalorder %s829_s19, %s1016_s7 }
  0x28   :  { %p835_p4 = pnand %p833_p3, %p830_p2 }
  0x2a   :  { %838 = shalt.err (!%p835_p4)
}
  0x2b   :  { %s839_s25 = scalar_lea.vmem %s57_s16, 2048  ;;  %p844_p6 = scmp.lt.s32.totalorder %s57_s16, %s57_s16 }
  0x2c   :  { %p840_p5 = scmp.ne.s32.totalorder %s57_s16, %s839_s25  ;;  %p845_p7 = scmp.lt.s32.totalorder %s839_s25, %s839_s25 }
  0x2e   :  { %p846_p8 = por %p845_p7, %p844_p6 }
  0x30   :  { %p847_p9 = pnand %p846_p8, %p840_p5 }
  0x32   :  { %850 = shalt.err (!%p847_p9)
}
  0x33   :  { %62 = dma.hbm_to_vmem [thread:$0]  %s1016_s7, 2048, %s57_s16, [#allocation6], %s883_s5, %s883_s5, %s884_s10  }
  0x34   :  { %873 = dma.done.wait [#allocation3], 1024  }
  0x35   :  { %874 = vsyncadd [#allocation3], 4294966272 }
  0x36   :  { %875 = dma.done.wait [#allocation6], 4096  }
  0x37   :  { %876 = vsyncadd [#allocation6], 4294963200  ;;  %v886_v0 = vmov 0.0   ;;  %vm82_vm0 = vcmask 1044480   ;;  %v77_v1 = vld [vmem:[%s1010_s1 + $0x8] sm:$0x1f]  ;;  %v302_v60 = vlaneseq }
  0x38   :  { %153 = vmatprep.mubr.f32.mxu0 %v886_v0  ;;  %706 = vmatprep.subr.bf16.mxu1 %v886_v0  ;;  %v76_v2 = vld [vmem:[%s1010_s1] sm:$0x1f]  ;;  %vm78_vm1 = vcmask 39936   ;;  %v737_v4 = vld [vmem:[#allocation2] sm:$0xff]   ;;  %v738_v5 = vld [vmem:[#allocation2 + $0x8] sm:$0xff]   ;;  %vm887_vm2 = vmmov 0  }
  0x39   :  { %v75_v3 = vld [vmem:[%s1009_s0] sm:$0xff]  ;;  %629 = vmatprep.subr.msk.mxu0 %vm82_vm0, %v77_v1  ;;  %707 = vmatpush3.bf16.msra.mxu1 %v737_v4  ;;  %v740_v7 = vld [vmem:[#allocation2 + $0x18] sm:$0xff]   ;;  %v741_v8 = vld [vmem:[#allocation2 + $0x20] sm:$0xff]   ;;  %v888_v35 = vmov 0   ;;  %v303_v61 = vshrl.u32 %v302_v60, 7 }
  0x3a   :  { %630 = vmatpush1.msk.msra.mxu0 %vm82_vm0, %v76_v2  ;;  %708 = vmatprep.subr.bf16.mxu1 %v886_v0  ;;  %v739_v6 = vld [vmem:[#allocation2 + $0x10] sm:$0xff]   ;;  %v742_v9 = vld [vmem:[#allocation2 + $0x28] sm:$0xff]   ;;  %v744_v11 = vld [vmem:[#allocation2 + $0x38] sm:$0xff]  }
  0x3b   :  { %631 = vmatmul.mubr.msk.f32.vlgmr.msra.gmra.mrb[0].mxu0 %vm78_vm1, %v75_v3  ;;  %v743_v10 = vld [vmem:[#allocation2 + $0x30] sm:$0xff]   ;;  %722 = vmatprep.mubr.msk.bf16.mxu1 %vm887_vm2, %v886_v0  ;;  %v745_v12 = vld [vmem:[#allocation5] ss:$8 sps:$4 sm:$0xff]   ;;  %v747_v13 = vld [vmem:[#allocation5 + $0x4] ss:$8 sps:$4 sm:$0xff]   ;;  %v304_v62 = vsub.s32 0, %v303_v61 }
  0x3c   :  { %v750_v14 = vld [vmem:[#allocation5 + $0x14] ss:$8 sps:$4 sm:$0xff]   ;;  %392 = vmatprep.subr.bf16.mxu0 %v747_v13  ;;  %v748_v15 = vld [vmem:[#allocation5 + $0x10] ss:$8 sps:$4 sm:$0xff]   ;;  %v753_v16 = vld [vmem:[#allocation5 + $0x24] ss:$8 sps:$4 sm:$0xff]   ;;  %424 = vmatprep.mubr.bf16.mxu0 %v888_v35 }
  0x3d   :  { %709 = vmatpush3.bf16.msra.mxu1 %v738_v5  ;;  %393 = vmatpush1.bf16.msra.mxu0 %v745_v12  ;;  %v751_v17 = vld [vmem:[#allocation5 + $0x20] ss:$8 sps:$4 sm:$0xff]   ;;  %v756_v18 = vld [vmem:[#allocation5 + $0x34] ss:$8 sps:$4 sm:$0xff]   ;;  %v754_v19 = vld [vmem:[#allocation5 + $0x30] ss:$8 sps:$4 sm:$0xff]  }
  0x3e   :  { %710 = vmatprep.subr.bf16.mxu1 %v886_v0  ;;  %394 = vmatprep.subr.bf16.mxu0 %v750_v14  ;;  %v759_v20 = vld [vmem:[#allocation5 + $0x44] ss:$8 sps:$4 sm:$0xff]   ;;  %v757_v21 = vld [vmem:[#allocation5 + $0x40] ss:$8 sps:$4 sm:$0xff]   ;;  %v762_v22 = vld [vmem:[#allocation5 + $0x54] ss:$8 sps:$4 sm:$0xff]  }
  0x3f   :  { %v760_v23 = vld [vmem:[#allocation5 + $0x50] ss:$8 sps:$4 sm:$0xff]   ;;  %v765_v24 = vld [vmem:[#allocation5 + $0x64] ss:$8 sps:$4 sm:$0xff]   ;;  %v763_v25 = vld [vmem:[#allocation5 + $0x60] ss:$8 sps:$4 sm:$0xff]  }
  0x40   :  { %v632_v28 = vld [vmem:[%s1011_s2] ss:$0 sm:$0xff]  ;;  %v768_v33 = vld [vmem:[#allocation5 + $0x74] ss:$8 sps:$4 sm:$0xff]   ;;  %v769_v36 = vld [vmem:[#allocation7 + $0x40] sm:$0xff]  }
  0x41   :  { %711 = vmatpush3.bf16.msra.mxu1 %v739_v6  ;;  %395 = vmatpush1.bf16.msra.mxu0 %v748_v15  ;;  %v766_v34 = vld [vmem:[#allocation5 + $0x70] ss:$8 sps:$4 sm:$0xff]   ;;  %v770_v37 = vld [vmem:[#allocation7] sm:$0xff]   ;;  %v771_v38 = vld [vmem:[#allocation7 + $0x48] sm:$0xff]  }
  0x42   :  { %712 = vmatprep.subr.bf16.mxu1 %v886_v0  ;;  %396 = vmatprep.subr.bf16.mxu0 %v753_v16  ;;  %v772_v39 = vld [vmem:[#allocation7 + $0x8] sm:$0xff]   ;;  %v773_v40 = vld [vmem:[#allocation7 + $0x50] sm:$0xff]   ;;  %v775_v42 = vld [vmem:[#allocation7 + $0x58] sm:$0xff]  }
  0x43   :  { %v774_v41 = vld [vmem:[#allocation7 + $0x10] sm:$0xff]   ;;  %v776_v43 = vld [vmem:[#allocation7 + $0x18] sm:$0xff]   ;;  %v777_v44 = vld [vmem:[#allocation7 + $0x60] sm:$0xff]  }
  0x44   :  { %v778_v45 = vld [vmem:[#allocation7 + $0x20] sm:$0xff]   ;;  %v779_v46 = vld [vmem:[#allocation7 + $0x68] sm:$0xff]   ;;  %v633_v48 = vld [vmem:[%s1013_s4] ss:$0 sm:$0xff] }
  0x45   :  { %713 = vmatpush3.bf16.msra.mxu1 %v740_v7  ;;  %397 = vmatpush1.bf16.msra.mxu0 %v751_v17  ;;  %v780_v47 = vld [vmem:[#allocation7 + $0x28] sm:$0xff]   ;;  %v781_v56 = vld [vmem:[#allocation7 + $0x70] sm:$0xff]   ;;  %v783_v58 = vld [vmem:[#allocation7 + $0x78] sm:$0xff]  }
  0x46   :  { %714 = vmatprep.subr.bf16.mxu1 %v886_v0  ;;  %398 = vmatprep.subr.bf16.mxu0 %v756_v18  ;;  %v782_v57 = vld [vmem:[#allocation7 + $0x30] sm:$0xff]   ;;  %v784_v59 = vld [vmem:[#allocation7 + $0x38] sm:$0xff]  }
  0x47   :  { %v300_v63 = vld [vmem:[%s1015_s6] sm:$0x3]  ;;  %s889_s6 = smov [#allocation8]  }
  0x48   :  { %v305_v1 = vrot.slane %v300_v63, %v304_v62  ;;  %v658_v14 = vld [vmem:[%s1017_s8] ss:$0 sm:$0xff]  ;;  %s619_s13 = sshll.u32 %s889_s6, 4  ;;  %s620_s13 = int_to_ptr.vmem [resolvable:$true] %s619_s13 }
  0x49   :  { %715 = vmatpush3.bf16.msra.mxu1 %v741_v8  ;;  %399 = vmatpush1.bf16.msra.mxu0 %v754_v19  ;;  %s851_s14 = scalar_lea.vmem %s620_s13, 128  ;;  %p856_p11 = scmp.lt.s32.totalorder %s620_s13, %s620_s13 }
  0x4a   :  { %716 = vmatprep.subr.bf16.mxu1 %v886_v0  ;;  %400 = vmatprep.subr.bf16.mxu0 %v759_v20  ;;  %p852_p10 = scmp.ne.s32.totalorder %s620_s13, %s851_s14  ;;  %p857_p12 = scmp.lt.s32.totalorder %s851_s14, %s851_s14 }
  0x4c   :  { %p858_p13 = por %p857_p12, %p856_p11 }
  0x4d   :  { %717 = vmatpush3.bf16.msra.mxu1 %v742_v9  ;;  %401 = vmatpush1.bf16.msra.mxu0 %v757_v21 }
  0x4e   :  { %718 = vmatprep.subr.bf16.mxu1 %v886_v0  ;;  %402 = vmatprep.subr.bf16.mxu0 %v762_v22  ;;  %p859_p0 = pnand %p858_p13, %p852_p10 }
  0x51   :  { %719 = vmatpush3.bf16.msra.mxu1 %v743_v10  ;;  %403 = vmatpush1.bf16.msra.mxu0 %v760_v23 }
  0x52   :  { %720 = vmatprep.subr.bf16.mxu1 %v886_v0  ;;  %404 = vmatprep.subr.bf16.mxu0 %v765_v24  ;;  %v308_v0 = vsub.s32 1, %v303_v61 }
  0x54   :  { %v309_v2 = vrot.slane %v300_v63, %v308_v0 }
  0x55   :  { %721 = vmatpush3.bf16.msra.mxu1 %v744_v11  ;;  %405 = vmatpush1.bf16.msra.mxu0 %v763_v25 }
  0x56   :  { %406 = vmatprep.subr.bf16.mxu0 %v768_v33  ;;  %684 = vmatprep.subr.bf16.mxu1 %v769_v36 }
  0x59   :  { %407 = vmatpush1.bf16.msra.mxu0 %v766_v34 }
 0x10e   :  { %v155_v26 = vpop.f32.mrb[0].mxu0 }
 0x10f   :  { %v157_v27 = vpop.f32.mrb[1].mxu0 }
 0x110   :  { %v160_v29 = vmax.f32 %v155_v26, %v157_v27 }
 0x112   :  { %v168_v30 = vadd.f32 %v632_v28, %v160_v29 }
 0x114   :  { %v169_v31 = vmax.f32 %v168_v30, 0.0 }
 0x116   :  { %v170_v32 = vpack.c.bf16 %v169_v31, %v169_v31 }
 0x118   :  { %723 = vmatmul.mubr.bf16.vlgmr.msra.gmra.mrb[0].mxu1 %v170_v32 }
 0x119   :  { %685 = vmatpush3.bf16.msra.mxu1 %v770_v37 }
 0x11a   :  { %686 = vmatprep.subr.bf16.mxu1 %v771_v38 }
 0x11d   :  { %687 = vmatpush3.bf16.msra.mxu1 %v772_v39 }
 0x11e   :  { %688 = vmatprep.subr.bf16.mxu1 %v773_v40 }
 0x121   :  { %689 = vmatpush3.bf16.msra.mxu1 %v774_v41 }
 0x122   :  { %690 = vmatprep.subr.bf16.mxu1 %v775_v42 }
 0x125   :  { %691 = vmatpush3.bf16.msra.mxu1 %v776_v43 }
 0x126   :  { %692 = vmatprep.subr.bf16.mxu1 %v777_v44 }
 0x129   :  { %693 = vmatpush3.bf16.msra.mxu1 %v778_v45 }
 0x12a   :  { %694 = vmatprep.subr.bf16.mxu1 %v779_v46 }
 0x12d   :  { %695 = vmatpush3.bf16.msra.mxu1 %v780_v47 }
 0x12e   :  { %696 = vmatprep.subr.bf16.mxu1 %v781_v56 }
 0x131   :  { %697 = vmatpush3.bf16.msra.mxu1 %v782_v57 }
 0x132   :  { %698 = vmatprep.subr.bf16.mxu1 %v783_v58 }
 0x135   :  { %699 = vmatpush3.bf16.msra.mxu1 %v784_v59 }
 0x1eb   :  { %v276_v49 = vpop.f32.mrb[0].mxu1 }
 0x1ec   :  { %v277_v50 = vadd.f32 %v633_v48, %v276_v49  ;;  %v724_v51 = vpop.f32.mrb[1].mxu1 }
 0x1ed   :  { %v279_v52 = vpop.f32.mrb[2].mxu1 }
 0x1ee   :  { %v282_v53 = vmax.f32 %v277_v50, 0.0  ;;  %v725_v54 = vpop.f32.mrb[3].mxu1 }
 0x1f0   :  { %v283_v55 = vpack.c.bf16 %v282_v53, %v282_v53 }
 0x1f2   :  { %425 = vmatmul.mubr.bf16.vlgmr.msra.gmra.mrb[4].mxu0 %v283_v55 }
 0x2c5   :  { %v426_v3 = vpop.f32.mrb[4].mxu0 }
 0x2c6   :  { %v427_v4 = vadd.f32 %v426_v3, %v305_v1  ;;  %v428_v5 = vpop.f32.mrb[5].mxu0 }
 0x2c7   :  { %v429_v6 = vadd.f32 %v428_v5, %v309_v2  ;;  %v430_v7 = vpop.f32.mrb[6].mxu0 }
 0x2c8   :  { %v433_v8 = vmax.f32 %v427_v4, 0.0  ;;  %v431_v9 = vpop.f32.mrb[7].mxu0 }
 0x2c9   :  { %v434_v10 = vmax.f32 %v429_v6, 0.0 }
 0x2ca   :  { %v435_v12 = vpack.c.bf16 %v433_v8, %v433_v8 }
 0x2cb   :  { %v436_v11 = vpack.c.bf16 %v434_v10, %v434_v10 }
 0x2cd   :  { %604 = vmatprep.mubr.bf16.mxu1 %v436_v11 }
 0x2ce   :  { %605 = vmatmul.mubr.bf16.vlgmr.msra.gmra.mrb[4].mxu1 %v435_v12 }
 0x3a1   :  { %v700_v13 = vpop.f32.mrb[4].mxu1 }
 0x3a2   :  { %v701_v15 = vpop.f32.mrb[5].mxu1 }
 0x3a3   :  { %v702_v16 = vadd.f32 %v701_v15, %v700_v13  ;;  %v703_v17 = vpop.f32.mrb[6].mxu1 }
 0x3a4   :  { %v704_v18 = vpop.f32.mrb[7].mxu1 }
 0x3a5   :  { %v607_v19 = vadd.f32 %v702_v16, %v658_v14 }
 0x3a7   :  { %612 = vst [vmem:[#allocation8] sm:$0xff] %v607_v19 }
 0x3a8   :  { %862 = shalt.err (!%p859_p0)
}
 0x3a9   :  { %s863_s8 = scalar_lea.hbm %s1018_s9, 128 }
 0x3aa   :  { %p864_p1 = scmp.ne.s32.totalorder %s1018_s9, %s863_s8  ;;  %p867_p2 = scmp.lt.u32.totalorder %s863_s8, %s1018_s9 }
 0x3ac   :  { %p869_p3 = pnand %p867_p2, %p864_p1 }
 0x3ae   :  { %872 = shalt.err (!%p869_p3)
}
 0x3af   :  { %622 = dma.vmem_to_hbm [thread:$0]  %s620_s13, 128, %s1018_s9, [#allocation4]  }
 0x3b0   :  { %877 = dma.done.wait [#allocation4], 128  }
 0x3b1   :  { %878 = vsyncadd [#allocation4], 4294967168 }
 0x3b2   :  { %626 = vsyncpa [#allocation3], 1 }
 0x3b3   :  { %627 = vsyncpa [#allocation6], 1 }
 0x3b4   :  { %628 = vsyncpa [#allocation4], 1 }

</bundles_post_ra>
